<compile_context>
chip_gen: v6e
topology: v6e:2x2x1
jax: 0.10.0
libtpu: 0.0.40
codegen_flags: <defaults>
</compile_context>

<pallas_src>
from itertools import combinations

import jax
import jax.numpy as jnp
from jax.experimental import pallas as pl
from jax.experimental.pallas import tpu as pltpu


# ----------------------------- configuration ------------------------------ #
FEATURE_SIZES = [11, 17, 23, 31, 37, 41, 43, 53]   # F = 8 fields
FIELD_SIZE = len(FEATURE_SIZES)                    # F
EMB_SIZE = 4                                       # E
MPL_DIMS = [FIELD_SIZE, 32, 8]                     # lin1: F->32, lin2: (P+32)->8
PAIRS = [list(idx) for idx in combinations(range(FIELD_SIZE), 2)]
NUM_PAIRS = len(PAIRS)                             # P = F*(F-1)/2 = 28

BATCH = 16
MAX_BATCH_TILE = 512                               # cap per-step tile size

_PREC = jax.lax.Precision.HIGHEST                  # keep f32 accuracy on MXU


# ------------------------------- kernel ----------------------------------- #
def deep_qi_kernel(e_ref, xv_ref, w1_ref, b1_ref, si_ref, sj_ref,
                   w2q_ref, w2h_ref, b2_ref, out_ref):
    """One batch tile of the DeepQI forward pass.

    e_ref   : (E, TB, F)  raw gathered embeddings, channel-major
    xv_ref  : (TB, F)     field values
    w1_ref  : (F, H)      lin1 weight (in, out)
    b1_ref  : (1, H)      lin1 bias
    si_ref  : (F, P)      0/1 selection of the left field of every pair
    sj_ref  : (F, P)      0/1 selection of the right field of every pair
    w2q_ref : (P, O)      lin2 weight rows acting on qi
    w2h_ref : (H, O)      lin2 weight rows acting on the hidden layer
    b2_ref  : (1, O)      lin2 bias
    out_ref : (TB, O)
    """
    xv = xv_ref[...]                               # (TB, F)
    si = si_ref[...]                               # (F, P)
    sj = sj_ref[...]                               # (F, P)

    # Quadratic interactions as matmuls (replaces the 28-pair loop + concat):
    #   qi[b, p] = sum_e (emb[e,b,i_p]*xv[b,i_p]) * (emb[e,b,j_p]*xv[b,j_p])
    qi = None
    for e in range(EMB_SIZE):
        xe = e_ref[e] * xv                         # (TB, F)  scaled channel e
        left = jnp.dot(xe, si, preferred_element_type=jnp.float32,
                       precision=_PREC)            # (TB, P)
        right = jnp.dot(xe, sj, preferred_element_type=jnp.float32,
                        precision=_PREC)           # (TB, P)
        term = left * right
        qi = term if qi is None else qi + term     # (TB, P)

    # lin1 -> ReLU (dropout is identity at inference)
    h = jnp.dot(xv, w1_ref[...], preferred_element_type=jnp.float32,
                precision=_PREC)
    h = jnp.maximum(h + b1_ref[...], 0.0)          # (TB, H)

    # lin2 over concat([qi, h]) with the concat folded away (split weights)
    out = (jnp.dot(qi, w2q_ref[...], preferred_element_type=jnp.float32,
                   precision=_PREC)
           + jnp.dot(h, w2h_ref[...], preferred_element_type=jnp.float32,
                     precision=_PREC)
           + b2_ref[...])                          # (TB, O)
    out_ref[...] = out.astype(out_ref.dtype)


# ------------------------------- wrapper ----------------------------------- #
def _round_up(x, m):
    return ((x + m - 1) // m) * m


def deep_qi_forward(xv, xi, emb_tables, w1, b1, w2, b2):
    """Glue: gather embeddings, split w2, then call the Pallas kernel."""
    B, F = xv.shape
    E = emb_tables[0].shape[1]
    H = w1.shape[1]
    O = w2.shape[1]
    P = NUM_PAIRS

    # Data-dependent gather (embedding lookup) stays in plain JAX, laid out
    # channel-major (E, B, F) so the kernel never touches a width-4 lane dim.
    e_raw = jnp.stack([emb_tables[f][xi[:, f]] for f in range(F)],
                      axis=-1)                       # (B, E, F)
    e_raw = jnp.transpose(e_raw, (1, 0, 2))          # (E, B, F)

    # Constant pair-selection matrices (built once, outside the kernel).
    pair_i = jnp.array([p[0] for p in PAIRS], jnp.int32)
    pair_j = jnp.array([p[1] for p in PAIRS], jnp.int32)
    cols = jnp.arange(P)
    sel_i = jnp.zeros((F, P), jnp.float32).at[pair_i, cols].set(1.0)
    sel_j = jnp.zeros((F, P), jnp.float32).at[pair_j, cols].set(1.0)

    # Split lin2 weights to delete the in-kernel concat.
    w2_qi = w2[:P]                                   # (P, O)
    w2_h = w2[P:]                                    # (H, O)

    # Batch tiling: big tiles, but keep >= 2 parallel steps when possible
    # (v7x has 2 TensorCores; on v5e/v6e the grid is just a sequential loop).
    tile = min(MAX_BATCH_TILE, _round_up(pl.cdiv(B, 2), 8))
    nb = pl.cdiv(B, tile)
    b_pad = nb * tile
    if b_pad != B:                                   # handle remainder rows
        e_raw = jnp.pad(e_raw, ((0, 0), (0, b_pad - B), (0, 0)))
        xv_in = jnp.pad(xv, ((0, b_pad - B), (0, 0)))
    else:
        xv_in = xv

    out = pl.pallas_call(
        deep_qi_kernel,
        out_shape=jax.ShapeDtypeStruct((b_pad, O), jnp.float32),
        grid=(nb,),
        in_specs=[
            pl.BlockSpec((E, tile, F), lambda b: (0, b, 0)),   # e_raw
            pl.BlockSpec((tile, F), lambda b: (b, 0)),         # xv
            pl.BlockSpec((F, H), lambda b: (0, 0)),            # w1   (resident)
            pl.BlockSpec((1, H), lambda b: (0, 0)),            # b1   (resident)
            pl.BlockSpec((F, P), lambda b: (0, 0)),            # sel_i(resident)
            pl.BlockSpec((F, P), lambda b: (0, 0)),            # sel_j(resident)
            pl.BlockSpec((P, O), lambda b: (0, 0)),            # w2_qi(resident)
            pl.BlockSpec((H, O), lambda b: (0, 0)),            # w2_h (resident)
            pl.BlockSpec((1, O), lambda b: (0, 0)),            # b2   (resident)
        ],
        out_specs=pl.BlockSpec((tile, O), lambda b: (b, 0)),
        compiler_params=pltpu.CompilerParams(
            dimension_semantics=("parallel",)),
    )(e_raw, xv_in, w1, b1, sel_i, sel_j, w2_qi, w2_h, b2)
    return out[:B]


# -------------------------- pure-JAX reference ----------------------------- #
def deep_qi_reference(xv, xi, emb_tables, w1, b1, w2, b2):
    F = xv.shape[1]
    e = jnp.stack(
        [emb_tables[f][xi[:, f]] * xv[:, f:f + 1] for f in range(F)], axis=1)
    qi = jnp.concatenate(
        [jnp.sum(e[:, i, :] * e[:, j, :], axis=-1, keepdims=True)
         for i, j in PAIRS], axis=1)
    h = jnp.maximum(jnp.dot(xv, w1, precision=_PREC) + b1, 0.0)
    z = jnp.concatenate([qi, h], axis=1)
    return jnp.dot(z, w2, precision=_PREC) + b2


# --------------------------------- main ------------------------------------ #
if __name__ == "__main__":
    key = jax.random.PRNGKey(0)
    keys = jax.random.split(key, FIELD_SIZE + 6)

    # Deterministic synthetic parameters (shapes follow the module __init__;
    # linear weights stored (in_features, out_features), i.e. y = x @ W + b).
    emb_tables = [
        jax.random.normal(keys[f], (FEATURE_SIZES[f], EMB_SIZE), jnp.float32)
        for f in range(FIELD_SIZE)
    ]
    H, O = MPL_DIMS[1], MPL_DIMS[2]
    w1 = 0.1 * jax.random.normal(keys[FIELD_SIZE + 0], (FIELD_SIZE, H), jnp.float32)
    b1 = 0.1 * jax.random.normal(keys[FIELD_SIZE + 1], (1, H), jnp.float32)
    w2 = 0.1 * jax.random.normal(keys[FIELD_SIZE + 2], (NUM_PAIRS + H, O), jnp.float32)
    b2 = 0.1 * jax.random.normal(keys[FIELD_SIZE + 3], (1, O), jnp.float32)

    # Example inputs.
    xv = jax.random.normal(keys[FIELD_SIZE + 4], (BATCH, FIELD_SIZE), jnp.float32)
    xi = jnp.stack(
        [jax.random.randint(jax.random.fold_in(keys[FIELD_SIZE + 5], f),
                            (BATCH,), 0, FEATURE_SIZES[f])
         for f in range(FIELD_SIZE)], axis=1).astype(jnp.int32)

    out = deep_qi_forward(xv, xi, emb_tables, w1, b1, w2, b2)
    out = jax.block_until_ready(out)

    ref = deep_qi_reference(xv, xi, emb_tables, w1, b1, w2, b2)
    assert out.shape == (BATCH, O)
    assert jnp.allclose(out, ref, atol=1e-4, rtol=1e-4), "mismatch vs reference"

    print("KERNEL_OK")
</pallas_src>

<mosaic_0001>
module attributes {stable_mosaic.version = 11 : i64} {
  func.func @deep_qi_kernel(%arg0: i32, %arg1: memref<4x8x8xf32, #tpu.memory_space<vmem>>, %arg2: memref<8x8xf32, #tpu.memory_space<vmem>>, %arg3: memref<8x32xf32, #tpu.memory_space<vmem>>, %arg4: memref<1x32xf32, #tpu.memory_space<vmem>>, %arg5: memref<8x28xf32, #tpu.memory_space<vmem>>, %arg6: memref<8x28xf32, #tpu.memory_space<vmem>>, %arg7: memref<28x8xf32, #tpu.memory_space<vmem>>, %arg8: memref<32x8xf32, #tpu.memory_space<vmem>>, %arg9: memref<1x8xf32, #tpu.memory_space<vmem>>, %arg10: memref<8x8xf32, #tpu.memory_space<vmem>>) attributes {dimension_semantics = [#tpu.dimension_semantics<parallel>], iteration_bounds = array<i64: 2>, scalar_prefetch = 0 : i64, scratch_operands = 0 : i64, tpu.core_type = #tpu.core_type<tc>, window_params = [{transform_indices = @transform_0, window_bounds = array<i64: 4, 8, 8>}, {transform_indices = @transform_1, window_bounds = array<i64: 8, 8>}, {pipeline_mode = #tpu.pipeline_mode<synchronous>, transform_indices = @transform_2, window_bounds = array<i64: 8, 32>}, {pipeline_mode = #tpu.pipeline_mode<synchronous>, transform_indices = @transform_3, window_bounds = array<i64: 1, 32>}, {pipeline_mode = #tpu.pipeline_mode<synchronous>, transform_indices = @transform_4, window_bounds = array<i64: 8, 28>}, {pipeline_mode = #tpu.pipeline_mode<synchronous>, transform_indices = @transform_5, window_bounds = array<i64: 8, 28>}, {pipeline_mode = #tpu.pipeline_mode<synchronous>, transform_indices = @transform_6, window_bounds = array<i64: 28, 8>}, {pipeline_mode = #tpu.pipeline_mode<synchronous>, transform_indices = @transform_7, window_bounds = array<i64: 32, 8>}, {pipeline_mode = #tpu.pipeline_mode<synchronous>, transform_indices = @transform_8, window_bounds = array<i64: 1, 8>}, {transform_indices = @transform_9, window_bounds = array<i64: 8, 8>}]} {
    %c0 = arith.constant 0 : index
    %c0_0 = arith.constant 0 : index
    %0 = vector.load %arg2[%c0, %c0_0] : memref<8x8xf32, #tpu.memory_space<vmem>>, vector<8x8xf32>
    %c0_1 = arith.constant 0 : index
    %c0_2 = arith.constant 0 : index
    %1 = vector.load %arg5[%c0_1, %c0_2] : memref<8x28xf32, #tpu.memory_space<vmem>>, vector<8x28xf32>
    %c0_3 = arith.constant 0 : index
    %c0_4 = arith.constant 0 : index
    %2 = vector.load %arg6[%c0_3, %c0_4] : memref<8x28xf32, #tpu.memory_space<vmem>>, vector<8x28xf32>
    %c0_5 = arith.constant 0 : index
    %c0_6 = arith.constant 0 : index
    %c0_7 = arith.constant 0 : index
    %3 = vector.load %arg1[%c0_5, %c0_6, %c0_7] : memref<4x8x8xf32, #tpu.memory_space<vmem>>, vector<1x8x8xf32>
    %4 = vector.shape_cast %3 : vector<1x8x8xf32> to vector<8x8xf32>
    %5 = arith.mulf %4, %0 : vector<8x8xf32>
    %cst = arith.constant dense<0.000000e+00> : vector<8x28xf32>
    %6 = tpu.matmul %5, %1, %cst {dimension_numbers = #tpu.dot_dimension_numbers<[1], [0], [0], [1], [0, 0, 1, 1], [], []>, precision = #tpu.contract_precision<fp32>} : vector<8x8xf32>, vector<8x28xf32>, vector<8x28xf32> -> vector<8x28xf32>
    %cst_8 = arith.constant dense<0.000000e+00> : vector<8x28xf32>
    %7 = tpu.matmul %5, %2, %cst_8 {dimension_numbers = #tpu.dot_dimension_numbers<[1], [0], [0], [1], [0, 0, 1, 1], [], []>, precision = #tpu.contract_precision<fp32>} : vector<8x8xf32>, vector<8x28xf32>, vector<8x28xf32> -> vector<8x28xf32>
    %8 = arith.mulf %6, %7 : vector<8x28xf32>
    %c1 = arith.constant 1 : index
    %c0_9 = arith.constant 0 : index
    %c0_10 = arith.constant 0 : index
    %9 = vector.load %arg1[%c1, %c0_9, %c0_10] : memref<4x8x8xf32, #tpu.memory_space<vmem>>, vector<1x8x8xf32>
    %10 = vector.shape_cast %9 : vector<1x8x8xf32> to vector<8x8xf32>
    %11 = arith.mulf %10, %0 : vector<8x8xf32>
    %cst_11 = arith.constant dense<0.000000e+00> : vector<8x28xf32>
    %12 = tpu.matmul %11, %1, %cst_11 {dimension_numbers = #tpu.dot_dimension_numbers<[1], [0], [0], [1], [0, 0, 1, 1], [], []>, precision = #tpu.contract_precision<fp32>} : vector<8x8xf32>, vector<8x28xf32>, vector<8x28xf32> -> vector<8x28xf32>
    %cst_12 = arith.constant dense<0.000000e+00> : vector<8x28xf32>
    %13 = tpu.matmul %11, %2, %cst_12 {dimension_numbers = #tpu.dot_dimension_numbers<[1], [0], [0], [1], [0, 0, 1, 1], [], []>, precision = #tpu.contract_precision<fp32>} : vector<8x8xf32>, vector<8x28xf32>, vector<8x28xf32> -> vector<8x28xf32>
    %14 = arith.mulf %12, %13 : vector<8x28xf32>
    %15 = arith.addf %8, %14 : vector<8x28xf32>
    %c2 = arith.constant 2 : index
    %c0_13 = arith.constant 0 : index
    %c0_14 = arith.constant 0 : index
    %16 = vector.load %arg1[%c2, %c0_13, %c0_14] : memref<4x8x8xf32, #tpu.memory_space<vmem>>, vector<1x8x8xf32>
    %17 = vector.shape_cast %16 : vector<1x8x8xf32> to vector<8x8xf32>
    %18 = arith.mulf %17, %0 : vector<8x8xf32>
    %cst_15 = arith.constant dense<0.000000e+00> : vector<8x28xf32>
    %19 = tpu.matmul %18, %1, %cst_15 {dimension_numbers = #tpu.dot_dimension_numbers<[1], [0], [0], [1], [0, 0, 1, 1], [], []>, precision = #tpu.contract_precision<fp32>} : vector<8x8xf32>, vector<8x28xf32>, vector<8x28xf32> -> vector<8x28xf32>
    %cst_16 = arith.constant dense<0.000000e+00> : vector<8x28xf32>
    %20 = tpu.matmul %18, %2, %cst_16 {dimension_numbers = #tpu.dot_dimension_numbers<[1], [0], [0], [1], [0, 0, 1, 1], [], []>, precision = #tpu.contract_precision<fp32>} : vector<8x8xf32>, vector<8x28xf32>, vector<8x28xf32> -> vector<8x28xf32>
    %21 = arith.mulf %19, %20 : vector<8x28xf32>
    %22 = arith.addf %15, %21 : vector<8x28xf32>
    %c3 = arith.constant 3 : index
    %c0_17 = arith.constant 0 : index
    %c0_18 = arith.constant 0 : index
    %23 = vector.load %arg1[%c3, %c0_17, %c0_18] : memref<4x8x8xf32, #tpu.memory_space<vmem>>, vector<1x8x8xf32>
    %24 = vector.shape_cast %23 : vector<1x8x8xf32> to vector<8x8xf32>
    %25 = arith.mulf %24, %0 : vector<8x8xf32>
    %cst_19 = arith.constant dense<0.000000e+00> : vector<8x28xf32>
    %26 = tpu.matmul %25, %1, %cst_19 {dimension_numbers = #tpu.dot_dimension_numbers<[1], [0], [0], [1], [0, 0, 1, 1], [], []>, precision = #tpu.contract_precision<fp32>} : vector<8x8xf32>, vector<8x28xf32>, vector<8x28xf32> -> vector<8x28xf32>
    %cst_20 = arith.constant dense<0.000000e+00> : vector<8x28xf32>
    %27 = tpu.matmul %25, %2, %cst_20 {dimension_numbers = #tpu.dot_dimension_numbers<[1], [0], [0], [1], [0, 0, 1, 1], [], []>, precision = #tpu.contract_precision<fp32>} : vector<8x8xf32>, vector<8x28xf32>, vector<8x28xf32> -> vector<8x28xf32>
    %28 = arith.mulf %26, %27 : vector<8x28xf32>
    %29 = arith.addf %22, %28 : vector<8x28xf32>
    %c0_21 = arith.constant 0 : index
    %c0_22 = arith.constant 0 : index
    %30 = vector.load %arg3[%c0_21, %c0_22] : memref<8x32xf32, #tpu.memory_space<vmem>>, vector<8x32xf32>
    %cst_23 = arith.constant dense<0.000000e+00> : vector<8x32xf32>
    %31 = tpu.matmul %0, %30, %cst_23 {dimension_numbers = #tpu.dot_dimension_numbers<[1], [0], [0], [1], [0, 0, 1, 1], [], []>, precision = #tpu.contract_precision<fp32>} : vector<8x8xf32>, vector<8x32xf32>, vector<8x32xf32> -> vector<8x32xf32>
    %c0_24 = arith.constant 0 : index
    %c0_25 = arith.constant 0 : index
    %32 = vector.load %arg4[%c0_24, %c0_25] : memref<1x32xf32, #tpu.memory_space<vmem>>, vector<1x32xf32>
    %33 = vector.broadcast %32 : vector<1x32xf32> to vector<8x32xf32>
    %34 = arith.addf %31, %33 : vector<8x32xf32>
    %cst_26 = arith.constant 0.000000e+00 : f32
    %35 = vector.broadcast %cst_26 : f32 to vector<8x32xf32>
    %36 = arith.maximumf %34, %35 : vector<8x32xf32>
    %c0_27 = arith.constant 0 : index
    %c0_28 = arith.constant 0 : index
    %37 = vector.load %arg7[%c0_27, %c0_28] : memref<28x8xf32, #tpu.memory_space<vmem>>, vector<28x8xf32>
    %cst_29 = arith.constant dense<0.000000e+00> : vector<8x8xf32>
    %38 = tpu.matmul %29, %37, %cst_29 {dimension_numbers = #tpu.dot_dimension_numbers<[1], [0], [0], [1], [0, 0, 1, 1], [], []>, precision = #tpu.contract_precision<fp32>} : vector<8x28xf32>, vector<28x8xf32>, vector<8x8xf32> -> vector<8x8xf32>
    %c0_30 = arith.constant 0 : index
    %c0_31 = arith.constant 0 : index
    %39 = vector.load %arg8[%c0_30, %c0_31] : memref<32x8xf32, #tpu.memory_space<vmem>>, vector<32x8xf32>
    %cst_32 = arith.constant dense<0.000000e+00> : vector<8x8xf32>
    %40 = tpu.matmul %36, %39, %cst_32 {dimension_numbers = #tpu.dot_dimension_numbers<[1], [0], [0], [1], [0, 0, 1, 1], [], []>, precision = #tpu.contract_precision<fp32>} : vector<8x32xf32>, vector<32x8xf32>, vector<8x8xf32> -> vector<8x8xf32>
    %41 = arith.addf %38, %40 : vector<8x8xf32>
    %c0_33 = arith.constant 0 : index
    %c0_34 = arith.constant 0 : index
    %42 = vector.load %arg9[%c0_33, %c0_34] : memref<1x8xf32, #tpu.memory_space<vmem>>, vector<1x8xf32>
    %43 = vector.broadcast %42 : vector<1x8xf32> to vector<8x8xf32>
    %44 = arith.addf %41, %43 : vector<8x8xf32>
    %c0_35 = arith.constant 0 : index
    %c0_36 = arith.constant 0 : index
    %45 = vector.load %arg10[%c0_35, %c0_36] : memref<8x8xf32, #tpu.memory_space<vmem>>, vector<8x8xf32>
    tpu.vector_store %arg10[%c0_35, %c0_36], %44 {strides = array<i32>} : memref<8x8xf32, #tpu.memory_space<vmem>>, vector<8x8xf32>,
    return
  }
  func.func @transform_0(%arg0: i32) -> (i32, i32, i32) {
    %c0_i32 = arith.constant 0 : i32
    %c0_i32_0 = arith.constant 0 : i32
    %c0_i32_1 = arith.constant 0 : i32
    return %c0_i32, %arg0, %c0_i32_0 : i32, i32, i32
  }
  func.func @transform_1(%arg0: i32) -> (i32, i32) {
    %c0_i32 = arith.constant 0 : i32
    %c0_i32_0 = arith.constant 0 : i32
    return %arg0, %c0_i32 : i32, i32
  }
  func.func @transform_2(%arg0: i32) -> (i32, i32) {
    %c0_i32 = arith.constant 0 : i32
    %c0_i32_0 = arith.constant 0 : i32
    %c0_i32_1 = arith.constant 0 : i32
    return %c0_i32, %c0_i32_0 : i32, i32
  }
  func.func @transform_3(%arg0: i32) -> (i32, i32) {
    %c0_i32 = arith.constant 0 : i32
    %c0_i32_0 = arith.constant 0 : i32
    %c0_i32_1 = arith.constant 0 : i32
    return %c0_i32, %c0_i32_0 : i32, i32
  }
  func.func @transform_4(%arg0: i32) -> (i32, i32) {
    %c0_i32 = arith.constant 0 : i32
    %c0_i32_0 = arith.constant 0 : i32
    %c0_i32_1 = arith.constant 0 : i32
    return %c0_i32, %c0_i32_0 : i32, i32
  }
  func.func @transform_5(%arg0: i32) -> (i32, i32) {
    %c0_i32 = arith.constant 0 : i32
    %c0_i32_0 = arith.constant 0 : i32
    %c0_i32_1 = arith.constant 0 : i32
    return %c0_i32, %c0_i32_0 : i32, i32
  }
  func.func @transform_6(%arg0: i32) -> (i32, i32) {
    %c0_i32 = arith.constant 0 : i32
    %c0_i32_0 = arith.constant 0 : i32
    %c0_i32_1 = arith.constant 0 : i32
    return %c0_i32, %c0_i32_0 : i32, i32
  }
  func.func @transform_7(%arg0: i32) -> (i32, i32) {
    %c0_i32 = arith.constant 0 : i32
    %c0_i32_0 = arith.constant 0 : i32
    %c0_i32_1 = arith.constant 0 : i32
    return %c0_i32, %c0_i32_0 : i32, i32
  }
  func.func @transform_8(%arg0: i32) -> (i32, i32) {
    %c0_i32 = arith.constant 0 : i32
    %c0_i32_0 = arith.constant 0 : i32
    %c0_i32_1 = arith.constant 0 : i32
    return %c0_i32, %c0_i32_0 : i32, i32
  }
  func.func @transform_9(%arg0: i32) -> (i32, i32) {
    %c0_i32 = arith.constant 0 : i32
    %c0_i32_0 = arith.constant 0 : i32
    return %arg0, %c0_i32 : i32, i32
  }
}

</mosaic_0001>

<bundles_post_ra>
// kernel: tpu_custom_call.1
= control target key start
LH: loop header
LB: loop body
LE: loop exit
PB: predicated region body
PF: predicated region fallthrough
CT: control target
= control target key end

     0   :  { %s6214_s30 = smov 0   ;;  %s6216_s10 = smov 0   ;;  %s6848_s0 = inlined_call_operand.vmem [shape: f32[4,16,8], index: 0, kind: input, shape index: {}]   ;;  %s6849_s1 = inlined_call_operand.vmem [shape: f32[16,8], index: 1, kind: input, shape index: {}]   ;;  %s6850_s2 = inlined_call_operand.vmem [shape: f32[8,32], index: 2, kind: input, shape index: {}]   ;;  %s6851_s3 = inlined_call_operand.vmem [shape: f32[1,32], index: 3, kind: input, shape index: {}]   ;;  %s6852_s4 = inlined_call_operand.vmem [shape: f32[8,28], index: 4, kind: input, shape index: {}]   ;;  %s6853_s5 = inlined_call_operand.vmem [shape: f32[8,28], index: 5, kind: input, shape index: {}]   ;;  %s6854_s6 = inlined_call_operand.vmem [shape: f32[28,8], index: 6, kind: input, shape index: {}]   ;;  %s6855_s7 = inlined_call_operand.vmem [shape: f32[32,8], index: 7, kind: input, shape index: {}]   ;;  %s6856_s8 = inlined_call_operand.vmem [shape: f32[1,8], index: 8, kind: input, shape index: {}]   ;;  %s6857_s9 = inlined_call_operand.vmem [shape: f32[16,8], index: 9, kind: output, shape index: {}]  }
   0x1   :  { %s6218_s11 = smov 0  }
   0x2 LB: > { %s5525_s12 = sadd.s32 4294967295, %s6160_s11   ;;  %s6231_s13 = sadd.s32 1, %s6160_s11   ;;  %s6160_s11 = sphi %s6218_s11, %s6860_s11   ;;  %s6156_s10 = sphi %s6216_s10, %s6859_s10   ;;  %s6152_s30 = sphi %s6214_s30, %s6858_s30  }
   0x3   : > { %s23_s14 = ssub.s32 %s6160_s11, %s6231_s13  ;;  %s26_s15 = sadd.s32 1, %s6156_s10 }
   0x4   : > { %p24_p0 = scmp.eq.s32.totalorder %s23_s14, 0  ;;  %p33_p1 = scmp.ne.s32.totalorder %s6156_s10, %s6152_s30 }
   0x5   : > { %p34_p2 = scmp.eq.s32.totalorder %s6160_s11, 0  ;;  %p5528_p4 = scmp.ge.s32.totalorder %s6160_s11, 2 }
   0x6   : > { %s6240_s16 = scalar_select %p24_p0, %s6156_s10, %s26_s15  }
   0x7   : > { %p35_p3 = por %p34_p2, %p33_p1  ;;  %279 = sbr.rel (%p5528_p4) target bundleno = 18 (0x12), region = 44 }
   0xc   : > { %282 = sbr.rel (!%p35_p3) target bundleno = 18 (0x12), region = 48  ;;  %s284_s17 = sand.u32 (%p35_p3), 1, %s6156_s10  }
   0xd   : > { %s5530_s18 = sshll.u32 (%p35_p3), %s6160_s11, 3  ;;  %s5529_s19 = sshll.u32 (%p35_p3), %s284_s17, 5 }
   0xe   : > { %s288_s22 = scalar_lea.vmem (%p35_p3), %s6848_s0, %s5530_s18  ;;  %s286_s23 = scalar_lea.vmem (%p35_p3), [#allocation2], %s5529_s19 }
   0xf   : > { %v323_v0 = vld [vmem:[%s288_s22] sm:$0xff] (%p35_p3)  ;;  %v325_v1 = vld [vmem:[%s288_s22 + $0x10] sm:$0xff] (%p35_p3) }
  0x10   : > { %v327_v2 = vld [vmem:[%s288_s22 + $0x20] sm:$0xff] (%p35_p3)  ;;  %324 = vst [vmem:[%s286_s23] sm:$0xff] (%p35_p3), %v323_v0  ;;  %326 = vst [vmem:[%s286_s23 + $0x8] sm:$0xff] (%p35_p3), %v325_v1  ;;  %v329_v3 = vld [vmem:[%s288_s22 + $0x30] sm:$0xff] (%p35_p3) }
  0x11   : > { %328 = vst [vmem:[%s286_s23 + $0x10] sm:$0xff] %v327_v2  ;;  %330 = vst [vmem:[%s286_s23 + $0x18] sm:$0xff] %v329_v3 }
  0x12 PF: > { %p5531_p5 = scmp.ge.s32.totalorder %s6160_s11, 1  ;;  %p342_p6 = scmp.lt.s32.totalorder %s6160_s11, 3 }
  0x14   : > { %p343_p7 = pnand %p5531_p5, %p342_p6 }
  0x15   : > { %s349_s26 = sand.u32 (!%p343_p7), 1, %s6152_s30   ;;  %p387_p8 = scmp.lt.s32.totalorder (!%p343_p7), %s5525_s12, 1 }
  0x16   : > { %346 = sbr.rel (%p343_p7) target bundleno = 607 (0x25f), region = 90  ;;  %s5532_s27 = sshll.u32 (!%p343_p7), %s349_s26, 5 }
  0x17   : > { %s6282_s14 = scalar_lea.vmem (!%p343_p7), [#allocation2], %s5532_s27 }
  0x1b   : > { %v396_v4 = vld [vmem:[%s6852_s4] sm:$0xff]  ;;  %v6162_v5 = vmov 0.0   ;;  %vm6163_vm0 = vmmov 0   ;;  %s6862_s12 = smov (!%p387_p8, %s5525_s12), 1  ;;  %v5537_v12 = vld [vmem:[%s6282_s14 + $0x18] sm:$0xff]  ;;  %vm400_vm1 = vcmask 64512  }
  0x1c   : > { %5710 = vmatprep.subr.mxu0 %v6162_v5  ;;  %v6257_v6 = vand.u32 4294901760, %v396_v4  ;;  %5715 = vmatprep.subr.mxu1 %v6162_v5  ;;  %v397_v7 = vld [vmem:[%s6853_s5] sm:$0xff]  ;;  %s5533_s30 = sshll.u32 %s6862_s12, 3  ;;  %v5535_v25 = vld [vmem:[%s6282_s14 + $0x8] sm:$0xff]  ;;  %v5536_v35 = vld [vmem:[%s6282_s14 + $0x10] sm:$0xff]  ;;  %vm4463_vm2 = vcmask 261120  }
  0x1d   : > { %5712 = vmatprep.mubr.msk.f32.mxu0 %vm6163_vm0, %v6162_v5  ;;  %5717 = vmatprep.mubr.msk.f32.mxu1 %vm6163_vm0, %v6162_v5  ;;  %v6275_v9 = vand.u32 4294901760, %v397_v7  ;;  %v398_v11 = vld [vmem:[%s6282_s14] sm:$0xff]  ;;  %s390_s17 = scalar_lea.vmem %s6849_s1, %s5533_s30  ;;  %v4462_v62 = vld [vmem:[%s6855_s7 + $0x18] sm:$0xff]  ;;  %v4461_v0 = vld [vmem:[%s6855_s7 + $0x10] sm:$0xff]  ;;  %vm4956_vm3 = vcmask 1043456   ;;  %vm4952_vm4 = vcmask 228352   ;;  %s394_s26 = scalar_lea.vmem %s6857_s9, %s5533_s30 }
  0x1e   : > { %5711 = vmatpush3.msra.mxu0 %v6257_v6  ;;  %v6269_v8 = vsub.f32 %v396_v4, %v6257_v6  ;;  %v6293_v14 = vld [vmem:[%s390_s17] sm:$0xff]  ;;  %v6601_v63 = vand.u32 4294901760, %v4462_v62  ;;  %v6609_v2 = vand.u32 4294901760, %v4461_v0  ;;  %v4460_v3 = vld [vmem:[%s6855_s7 + $0x8] sm:$0xff] }
  0x1f   : > { %5720 = vmatprep.subr.mxu0 %v6162_v5  ;;  %v6296_v15 = vsub.f32 %v397_v7, %v6275_v9  ;;  %v399_v16 = vmul.f32 %v398_v11, %v6293_v14  ;;  %v6302_v18 = vmul.f32 %v5537_v12, %v6293_v14  ;;  %v1299_v27 = vmul.f32 %v5535_v25, %v6293_v14  ;;  %v3997_v48 = vld [vmem:[%s6850_s2] sm:$0xff] }
  0x20   : > { %v6279_v10 = vand.u32 4294901760, %v6269_v8  ;;  %v2199_v37 = vmul.f32 %v5536_v35, %v6293_v14  ;;  %v6512_v50 = vand.u32 4294901760, %v3997_v48  ;;  %v4006_v53 = vsel %vm400_vm1, %v6293_v14, 0 }
  0x21   : > { %v402_v19 = vsel %vm400_vm1, %v399_v16, 0  ;;  %v6309_v21 = vand.u32 4294901760, %v6296_v15  ;;  %v1301_v30 = vsel %vm400_vm1, %v1299_v27, 0  ;;  %v3101_v44 = vsel %vm400_vm1, %v6302_v18, 0 }
  0x22   : > { %v514_v13 = vsub.f32 %v6269_v8, %v6279_v10  ;;  %v6306_v20 = vand.u32 4294901760, %v402_v19  ;;  %v6339_v31 = vand.u32 4294901760, %v1301_v30  ;;  %v2201_v38 = vsel %vm400_vm1, %v2199_v37, 0 }
  0x23   : > { %v960_v24 = vsub.f32 %v6296_v15, %v6309_v21  ;;  %v6404_v39 = vand.u32 4294901760, %v2201_v38  ;;  %v6469_v45 = vand.u32 4294901760, %v3101_v44  ;;  %v6524_v52 = vsub.f32 %v3997_v48, %v6512_v50 }
  0x24   : > { %v6299_v17 = vand.u32 4294901760, %v514_v13  ;;  %v471_v22 = vsub.f32 %v402_v19, %v6306_v20  ;;  %v6351_v32 = vsub.f32 %v1301_v30, %v6339_v31  ;;  %v4074_v55 = vand.u32 4294901760, %v4006_v53 }
  0x25   : > { %v6326_v29 = vand.u32 4294901760, %v960_v24  ;;  %v6416_v40 = vsub.f32 %v2201_v38, %v6404_v39  ;;  %v6481_v46 = vsub.f32 %v3101_v44, %v6469_v45  ;;  %v4117_v54 = vand.u32 4294901760, %v6524_v52 }
  0x26   : > { %5716 = vmatpush3.msra.mxu1 %v6299_v17  ;;  %v472_v23 = vand.u32 4294901760, %v471_v22  ;;  %v1371_v33 = vand.u32 4294901760, %v6351_v32  ;;  %v4075_v57 = vsub.f32 %v4006_v53, %v4074_v55  ;;  %v6607_v1 = vsub.f32 %v4462_v62, %v6601_v63 }
  0x27   : > { %5725 = vmatprep.subr.mxu1 %v6162_v5  ;;  %5718 = vmatmul.mubr.f32.vlgmr.msra.gmra.mxu1 %v6306_v20  ;;  %v2271_v41 = vand.u32 4294901760, %v6416_v40  ;;  %v3171_v47 = vand.u32 4294901760, %v6481_v46  ;;  %v4118_v56 = vsub.f32 %v6524_v52, %v4117_v54  ;;  %v6620_v7 = vand.u32 4294901760, %v4460_v3 }
  0x28   : > { %5726 = vmatpush3.msra.mxu1 %v6257_v6  ;;  %5727 = vmatprep.mubr.msk.f32.mxu1 %vm6163_vm0, %v6162_v5  ;;  %v473_v26 = vsub.f32 %v471_v22, %v472_v23  ;;  %v1372_v34 = vsub.f32 %v6351_v32, %v1371_v33  ;;  %v4076_v59 = vand.u32 4294901760, %v4075_v57  ;;  %v4573_v4 = vand.u32 4294901760, %v6607_v1 }
  0x29   : > { %5735 = vmatprep.subr.mxu1 %v6162_v5  ;;  %v2272_v42 = vsub.f32 %v6416_v40, %v2271_v41  ;;  %v3172_v49 = vsub.f32 %v6481_v46, %v3171_v47  ;;  %v4119_v58 = vand.u32 4294901760, %v4118_v56  ;;  %v6632_v11 = vsub.f32 %v4460_v3, %v6620_v7 }
  0x2a   : > { %v474_v28 = vand.u32 4294901760, %v473_v26  ;;  %v1373_v36 = vand.u32 4294901760, %v1372_v34  ;;  %v4077_v60 = vsub.f32 %v4075_v57, %v4076_v59 }
  0x2b   : > { %5728 = vmatmul.mubr.f32.vlgmr.msra.gmra.mxu1 %v472_v23  ;;  %v2273_v43 = vand.u32 4294901760, %v2272_v42  ;;  %v3173_v51 = vand.u32 4294901760, %v3172_v49 }
  0x2c   : > { %5736 = vmatpush3.msra.mxu1 %v6257_v6  ;;  %5737 = vmatprep.mubr.msk.f32.mxu1 %vm6163_vm0, %v6162_v5  ;;  %v4078_v61 = vand.u32 4294901760, %v4077_v60 }
  0x2d   : > { %5745 = vmatprep.subr.mxu1 %v6162_v5  ;;  %5713 = vmatmul.mubr.f32.vlgmr.msra.gmra.mxu0 %v474_v28 }
  0x2e   : > { %5721 = vmatpush3.msra.mxu0 %v6269_v8  ;;  %5722 = vmatprep.mubr.msk.f32.mxu0 %vm6163_vm0, %v6162_v5 }
  0x2f   : > { %5738 = vmatmul.mubr.f32.vlgmr.msra.gmra.mxu1 %v6306_v20  ;;  %5730 = vmatprep.subr.mxu0 %v6162_v5 }
  0x30   : > { %5746 = vmatpush3.msra.mxu1 %v6326_v29  ;;  %5747 = vmatprep.mubr.msk.f32.mxu1 %vm6163_vm0, %v6162_v5 }
  0x31   : > { %5755 = vmatprep.subr.mxu1 %v6162_v5  ;;  %5723 = vmatmul.mubr.f32.vlgmr.msra.gmra.mxu0 %v471_v22 }
  0x32   : > { %5731 = vmatpush3.msra.mxu0 %v6279_v10  ;;  %5732 = vmatprep.mubr.msk.f32.mxu0 %vm6163_vm0, %v6162_v5 }
  0x33   : > { %5748 = vmatmul.mubr.f32.vlgmr.msra.gmra.mxu1 %v6306_v20  ;;  %5740 = vmatprep.subr.mxu0 %v6162_v5 }
  0x34   : > { %5756 = vmatpush3.msra.mxu1 %v6275_v9  ;;  %5757 = vmatprep.mubr.msk.f32.mxu1 %vm6163_vm0, %v6162_v5 }
  0x35   : > { %5765 = vmatprep.subr.mxu1 %v6162_v5  ;;  %5733 = vmatmul.mubr.f32.vlgmr.msra.gmra.mxu0 %v6306_v20 }
  0x36   : > { %5741 = vmatpush3.msra.mxu0 %v6275_v9  ;;  %5742 = vmatprep.mubr.msk.f32.mxu0 %vm6163_vm0, %v6162_v5 }
  0x37   : > { %5758 = vmatmul.mubr.f32.vlgmr.msra.gmra.mxu1 %v472_v23  ;;  %5750 = vmatprep.subr.mxu0 %v6162_v5 }
  0x38   : > { %5766 = vmatpush3.msra.mxu1 %v6275_v9  ;;  %5767 = vmatprep.mubr.msk.f32.mxu1 %vm6163_vm0, %v6162_v5 }
  0x39   : > { %5775 = vmatprep.subr.mxu1 %v6162_v5  ;;  %5743 = vmatmul.mubr.f32.vlgmr.msra.gmra.mxu0 %v474_v28 }
  0x3a   : > { %5751 = vmatpush3.msra.mxu0 %v6296_v15  ;;  %5752 = vmatprep.mubr.msk.f32.mxu0 %vm6163_vm0, %v6162_v5 }
  0x3b   : > { %5768 = vmatmul.mubr.f32.vlgmr.msra.gmra.mxu1 %v6306_v20  ;;  %5760 = vmatprep.subr.mxu0 %v6162_v5 }
  0x3c   : > { %5776 = vmatpush3.msra.mxu1 %v6299_v17  ;;  %5777 = vmatprep.mubr.msk.f32.mxu1 %vm6163_vm0, %v6162_v5 }
  0x3d   : > { %5785 = vmatprep.subr.mxu1 %v6162_v5  ;;  %5753 = vmatmul.mubr.f32.vlgmr.msra.gmra.mxu0 %v471_v22 }
  0x3e   : > { %5761 = vmatpush3.msra.mxu0 %v6309_v21  ;;  %5762 = vmatprep.mubr.msk.f32.mxu0 %vm6163_vm0, %v6162_v5 }
  0x3f   : > { %5778 = vmatmul.mubr.f32.vlgmr.msra.gmra.mxu1 %v6339_v31  ;;  %5770 = vmatprep.subr.mxu0 %v6162_v5 }
  0x40   : > { %5786 = vmatpush3.msra.mxu1 %v6257_v6  ;;  %5787 = vmatprep.mubr.msk.f32.mxu1 %vm6163_vm0, %v6162_v5 }
  0x41   : > { %5795 = vmatprep.subr.mxu1 %v6162_v5  ;;  %5763 = vmatmul.mubr.f32.vlgmr.msra.gmra.mxu0 %v6306_v20 }
  0x42   : > { %5771 = vmatpush3.msra.mxu0 %v6257_v6  ;;  %5772 = vmatprep.mubr.msk.f32.mxu0 %vm6163_vm0, %v6162_v5 }
  0x43   : > { %5788 = vmatmul.mubr.f32.vlgmr.msra.gmra.mxu1 %v1371_v33  ;;  %5780 = vmatprep.subr.mxu0 %v6162_v5 }
  0x44   : > { %5796 = vmatpush3.msra.mxu1 %v6257_v6  ;;  %5797 = vmatprep.mubr.msk.f32.mxu1 %vm6163_vm0, %v6162_v5 }
  0x45   : > { %5805 = vmatprep.subr.mxu1 %v6162_v5  ;;  %5773 = vmatmul.mubr.f32.vlgmr.msra.gmra.mxu0 %v1373_v36 }
  0x46   : > { %5781 = vmatpush3.msra.mxu0 %v6269_v8  ;;  %5782 = vmatprep.mubr.msk.f32.mxu0 %vm6163_vm0, %v6162_v5 }
  0x47   : > { %5798 = vmatmul.mubr.f32.vlgmr.msra.gmra.mxu1 %v6339_v31  ;;  %5790 = vmatprep.subr.mxu0 %v6162_v5 }
  0x48   : > { %5806 = vmatpush3.msra.mxu1 %v6326_v29  ;;  %5807 = vmatprep.mubr.msk.f32.mxu1 %vm6163_vm0, %v6162_v5 }
  0x49   : > { %5815 = vmatprep.subr.mxu1 %v6162_v5  ;;  %5783 = vmatmul.mubr.f32.vlgmr.msra.gmra.mxu0 %v6351_v32 }
  0x4a   : > { %5791 = vmatpush3.msra.mxu0 %v6279_v10  ;;  %5792 = vmatprep.mubr.msk.f32.mxu0 %vm6163_vm0, %v6162_v5 }
  0x4b   : > { %5808 = vmatmul.mubr.f32.vlgmr.msra.gmra.mxu1 %v6339_v31  ;;  %5800 = vmatprep.subr.mxu0 %v6162_v5 }
  0x4c   : > { %5816 = vmatpush3.msra.mxu1 %v6275_v9  ;;  %5817 = vmatprep.mubr.msk.f32.mxu1 %vm6163_vm0, %v6162_v5 }
  0x4d   : > { %5825 = vmatprep.subr.mxu1 %v6162_v5  ;;  %5793 = vmatmul.mubr.f32.vlgmr.msra.gmra.mxu0 %v6339_v31 }
  0x4e   : > { %5801 = vmatpush3.msra.mxu0 %v6275_v9  ;;  %5802 = vmatprep.mubr.msk.f32.mxu0 %vm6163_vm0, %v6162_v5 }
  0x4f   : > { %5818 = vmatmul.mubr.f32.vlgmr.msra.gmra.mxu1 %v1371_v33  ;;  %5810 = vmatprep.subr.mxu0 %v6162_v5 }
  0x50   : > { %5826 = vmatpush3.msra.mxu1 %v6275_v9  ;;  %5827 = vmatprep.mubr.msk.f32.mxu1 %vm6163_vm0, %v6162_v5 }
  0x51   : > { %5835 = vmatprep.subr.mxu1 %v6162_v5  ;;  %5803 = vmatmul.mubr.f32.vlgmr.msra.gmra.mxu0 %v1373_v36 }
  0x52   : > { %5811 = vmatpush3.msra.mxu0 %v6296_v15  ;;  %5812 = vmatprep.mubr.msk.f32.mxu0 %vm6163_vm0, %v6162_v5 }
  0x53   : > { %5828 = vmatmul.mubr.f32.vlgmr.msra.gmra.mxu1 %v6339_v31  ;;  %5820 = vmatprep.subr.mxu0 %v6162_v5 }
  0x54   : > { %5836 = vmatpush3.msra.mxu1 %v6299_v17  ;;  %5837 = vmatprep.mubr.msk.f32.mxu1 %vm6163_vm0, %v6162_v5 }
  0x55   : > { %5845 = vmatprep.subr.mxu1 %v6162_v5  ;;  %5813 = vmatmul.mubr.f32.vlgmr.msra.gmra.mxu0 %v6351_v32 }
  0x56   : > { %5821 = vmatpush3.msra.mxu0 %v6309_v21  ;;  %5822 = vmatprep.mubr.msk.f32.mxu0 %vm6163_vm0, %v6162_v5 }
  0x57   : > { %5838 = vmatmul.mubr.f32.vlgmr.msra.gmra.mxu1 %v6404_v39  ;;  %5830 = vmatprep.subr.mxu0 %v6162_v5 }
  0x58   : > { %5846 = vmatpush3.msra.mxu1 %v6257_v6  ;;  %5847 = vmatprep.mubr.msk.f32.mxu1 %vm6163_vm0, %v6162_v5 }
  0x59   : > { %5855 = vmatprep.subr.mxu1 %v6162_v5  ;;  %5823 = vmatmul.mubr.f32.vlgmr.msra.gmra.mxu0 %v6339_v31 }
  0x5a   : > { %5831 = vmatpush3.msra.mxu0 %v6257_v6  ;;  %5832 = vmatprep.mubr.msk.f32.mxu0 %vm6163_vm0, %v6162_v5 }
  0x5b   : > { %5848 = vmatmul.mubr.f32.vlgmr.msra.gmra.mxu1 %v2271_v41  ;;  %5840 = vmatprep.subr.mxu0 %v6162_v5 }
  0x5c   : > { %5856 = vmatpush3.msra.mxu1 %v6257_v6  ;;  %5857 = vmatprep.mubr.msk.f32.mxu1 %vm6163_vm0, %v6162_v5 }
  0x5d   : > { %5865 = vmatprep.subr.mxu1 %v6162_v5  ;;  %5833 = vmatmul.mubr.f32.vlgmr.msra.gmra.mxu0 %v2273_v43 }
  0x5e   : > { %5841 = vmatpush3.msra.mxu0 %v6269_v8  ;;  %5842 = vmatprep.mubr.msk.f32.mxu0 %vm6163_vm0, %v6162_v5 }
  0x5f   : > { %5858 = vmatmul.mubr.f32.vlgmr.msra.gmra.mxu1 %v6404_v39  ;;  %5850 = vmatprep.subr.mxu0 %v6162_v5 }
  0x60   : > { %5866 = vmatpush3.msra.mxu1 %v6326_v29  ;;  %5867 = vmatprep.mubr.msk.f32.mxu1 %vm6163_vm0, %v6162_v5 }
  0x61   : > { %5875 = vmatprep.subr.mxu1 %v6162_v5  ;;  %5843 = vmatmul.mubr.f32.vlgmr.msra.gmra.mxu0 %v6416_v40 }
  0x62   : > { %5851 = vmatpush3.msra.mxu0 %v6279_v10  ;;  %5852 = vmatprep.mubr.msk.f32.mxu0 %vm6163_vm0, %v6162_v5 }
  0x63   : > { %5868 = vmatmul.mubr.f32.vlgmr.msra.gmra.mxu1 %v6404_v39  ;;  %5860 = vmatprep.subr.mxu0 %v6162_v5 }
  0x64   : > { %5876 = vmatpush3.msra.mxu1 %v6275_v9  ;;  %5877 = vmatprep.mubr.msk.f32.mxu1 %vm6163_vm0, %v6162_v5 }
  0x65   : > { %5885 = vmatprep.subr.mxu1 %v6162_v5  ;;  %5853 = vmatmul.mubr.f32.vlgmr.msra.gmra.mxu0 %v6404_v39 }
  0x66   : > { %5861 = vmatpush3.msra.mxu0 %v6275_v9  ;;  %5862 = vmatprep.mubr.msk.f32.mxu0 %vm6163_vm0, %v6162_v5 }
  0x67   : > { %5878 = vmatmul.mubr.f32.vlgmr.msra.gmra.mxu1 %v2271_v41  ;;  %5870 = vmatprep.subr.mxu0 %v6162_v5 }
  0x68   : > { %5886 = vmatpush3.msra.mxu1 %v6275_v9  ;;  %5887 = vmatprep.mubr.msk.f32.mxu1 %vm6163_vm0, %v6162_v5 }
  0x69   : > { %5895 = vmatprep.subr.mxu1 %v6162_v5  ;;  %5863 = vmatmul.mubr.f32.vlgmr.msra.gmra.mxu0 %v2273_v43 }
  0x6a   : > { %5871 = vmatpush3.msra.mxu0 %v6296_v15  ;;  %5872 = vmatprep.mubr.msk.f32.mxu0 %vm6163_vm0, %v6162_v5 }
  0x6b   : > { %5888 = vmatmul.mubr.f32.vlgmr.msra.gmra.mxu1 %v6404_v39  ;;  %5880 = vmatprep.subr.mxu0 %v6162_v5 }
  0x6c   : > { %5896 = vmatpush3.msra.mxu1 %v6299_v17  ;;  %5897 = vmatprep.mubr.msk.f32.mxu1 %vm6163_vm0, %v6162_v5 }
  0x6d   : > { %5905 = vmatprep.subr.mxu1 %v6162_v5  ;;  %5873 = vmatmul.mubr.f32.vlgmr.msra.gmra.mxu0 %v6416_v40 }
  0x6e   : > { %5881 = vmatpush3.msra.mxu0 %v6309_v21  ;;  %5882 = vmatprep.mubr.msk.f32.mxu0 %vm6163_vm0, %v6162_v5 }
  0x6f   : > { %5898 = vmatmul.mubr.f32.vlgmr.msra.gmra.mxu1 %v6469_v45  ;;  %5890 = vmatprep.subr.mxu0 %v6162_v5 }
  0x70   : > { %5906 = vmatpush3.msra.mxu1 %v6257_v6  ;;  %5907 = vmatprep.mubr.msk.f32.mxu1 %vm6163_vm0, %v6162_v5 }
  0x71   : > { %5915 = vmatprep.subr.mxu1 %v6162_v5  ;;  %5883 = vmatmul.mubr.f32.vlgmr.msra.gmra.mxu0 %v6404_v39 }
  0x72   : > { %5891 = vmatpush3.msra.mxu0 %v6257_v6  ;;  %5892 = vmatprep.mubr.msk.f32.mxu0 %vm6163_vm0, %v6162_v5 }
  0x73   : > { %5908 = vmatmul.mubr.f32.vlgmr.msra.gmra.mxu1 %v3171_v47  ;;  %5900 = vmatprep.subr.mxu0 %v6162_v5 }
  0x74   : > { %5916 = vmatpush3.msra.mxu1 %v6257_v6  ;;  %5917 = vmatprep.mubr.msk.f32.mxu1 %vm6163_vm0, %v6162_v5  ;;  %v6618_v6 = vsub.f32 %v4461_v0, %v6609_v2 }
  0x75   : > { %5925 = vmatprep.subr.mxu1 %v6162_v5  ;;  %5893 = vmatmul.mubr.f32.vlgmr.msra.gmra.mxu0 %v3173_v51 }
  0x76   : > { %5901 = vmatpush3.msra.mxu0 %v6269_v8  ;;  %5902 = vmatprep.mubr.msk.f32.mxu0 %vm6163_vm0, %v6162_v5  ;;  %v4459_v8 = vld [vmem:[%s6855_s7] sm:$0xff] }
  0x77   : > { %5918 = vmatmul.mubr.f32.vlgmr.msra.gmra.mxu1 %v6469_v45  ;;  %5910 = vmatprep.subr.mxu0 %v6162_v5  ;;  %v6634_v12 = vand.u32 4294901760, %v4459_v8 }
  0x78   : > { %5926 = vmatpush3.msra.mxu1 %v6326_v29  ;;  %5927 = vmatprep.mubr.msk.f32.mxu1 %vm6163_vm0, %v6162_v5 }
  0x79   : > { %5935 = vmatprep.subr.mxu1 %v6162_v5  ;;  %5903 = vmatmul.mubr.f32.vlgmr.msra.gmra.mxu0 %v6481_v46  ;;  %v6643_v16 = vsub.f32 %v4459_v8, %v6634_v12 }
  0x7a   : > { %5911 = vmatpush3.msra.mxu0 %v6279_v10  ;;  %5912 = vmatprep.mubr.msk.f32.mxu0 %vm6163_vm0, %v6162_v5  ;;  %v4580_v10 = vand.u32 4294901760, %v6618_v6 }
  0x7b   : > { %5928 = vmatmul.mubr.f32.vlgmr.msra.gmra.mxu1 %v6469_v45  ;;  %5920 = vmatprep.subr.mxu0 %v6162_v5  ;;  %v4594_v19 = vand.u32 4294901760, %v6643_v16 }
  0x7c   : > { %5936 = vmatpush3.msra.mxu1 %v6275_v9  ;;  %5937 = vmatprep.mubr.msk.f32.mxu1 %vm6163_vm0, %v6162_v5  ;;  %v4581_v14 = vsub.f32 %v6618_v6, %v4580_v10 }
  0x7d   : > { %5945 = vmatprep.subr.mxu1 %v6162_v5  ;;  %5913 = vmatmul.mubr.f32.vlgmr.msra.gmra.mxu0 %v6469_v45 }
  0x7e   : > { %5921 = vmatpush3.msra.mxu0 %v6275_v9  ;;  %5922 = vmatprep.mubr.msk.f32.mxu0 %vm6163_vm0, %v6162_v5  ;;  %v4582_v17 = vand.u32 4294901760, %v4581_v14 }
  0x7f   : > { %5938 = vmatmul.mubr.f32.vlgmr.msra.gmra.mxu1 %v3171_v47  ;;  %5930 = vmatprep.subr.mxu0 %v6162_v5 }
  0x80   : > { %5946 = vmatpush3.msra.mxu1 %v6275_v9  ;;  %5947 = vmatprep.mubr.msk.f32.mxu1 %vm6163_vm0, %v6162_v5  ;;  %v4574_v9 = vsub.f32 %v6607_v1, %v4573_v4 }
  0x81   : > { %5955 = vmatprep.subr.mxu1 %v6162_v5  ;;  %5923 = vmatmul.mubr.f32.vlgmr.msra.gmra.mxu0 %v3173_v51 }
  0x82   : > { %5931 = vmatpush3.msra.mxu0 %v6296_v15  ;;  %5932 = vmatprep.mubr.msk.f32.mxu0 %vm6163_vm0, %v6162_v5  ;;  %v4575_v13 = vand.u32 4294901760, %v4574_v9  ;;  %v4587_v15 = vand.u32 4294901760, %v6632_v11 }
  0x83   : > { %5948 = vmatmul.mubr.f32.vlgmr.msra.gmra.mxu1 %v6469_v45  ;;  %5940 = vmatprep.subr.mxu0 %v6162_v5 }
  0x84   : > { %5956 = vmatpush3.msra.mxu1 %v4119_v58  ;;  %5957 = vmatprep.mubr.msk.f32.mxu1 %vm6163_vm0, %v6162_v5  ;;  %v4588_v18 = vsub.f32 %v6632_v11, %v4587_v15 }
  0x85   : > { %5965 = vmatprep.subr.mxu1 %v6162_v5  ;;  %5933 = vmatmul.mubr.f32.vlgmr.msra.gmra.mxu0 %v6481_v46 }
  0x86   : > { %5941 = vmatpush3.msra.mxu0 %v6309_v21  ;;  %5942 = vmatprep.mubr.msk.f32.mxu0 %vm6163_vm0, %v6162_v5  ;;  %v4589_v20 = vand.u32 4294901760, %v4588_v18  ;;  %v4595_v21 = vsub.f32 %v6643_v16, %v4594_v19 }
  0x87   : > { %5958 = vmatmul.mubr.f32.vlgmr.msra.gmra.mxu1 %v4074_v55  ;;  %5950 = vmatprep.subr.mxu0 %v6162_v5 }
  0x88   : > { %5966 = vmatpush3.msra.mxu1 %v6512_v50  ;;  %5967 = vmatprep.mubr.msk.f32.mxu1 %vm6163_vm0, %v6162_v5  ;;  %v4596_v22 = vand.u32 4294901760, %v4595_v21 }
  0x89   : > { %5975 = vmatprep.subr.mxu1 %v6162_v5  ;;  %5943 = vmatmul.mubr.f32.vlgmr.msra.gmra.mxu0 %v6469_v45 }
  0x8a   : > { %5951 = vmatpush3.msra.mxu0 %v6512_v50  ;;  %5952 = vmatprep.mubr.msk.f32.mxu0 %vm6163_vm0, %v6162_v5 }
  0x8b   : > { %5968 = vmatmul.mubr.f32.vlgmr.msra.gmra.mxu1 %v4076_v59  ;;  %5960 = vmatprep.subr.mxu0 %v6162_v5 }
  0x8c   : > { %5976 = vmatpush3.msra.mxu1 %v6512_v50  ;;  %5977 = vmatprep.mubr.msk.f32.mxu1 %vm6163_vm0, %v6162_v5 }
  0x8d   : > { %5991 = vmatprep.subr.mxu1 %v6162_v5  ;;  %5953 = vmatmul.mubr.f32.vlgmr.msra.gmra.mxu0 %v4078_v61 }
  0x8e   : > { %5961 = vmatpush3.msra.mxu0 %v6524_v52  ;;  %5962 = vmatprep.mubr.msk.f32.mxu0 %vm6163_vm0, %v6162_v5 }
  0x8f   : > { %5978 = vmatmul.mubr.f32.vlgmr.msra.gmra.mxu1 %v4074_v55  ;;  %5970 = vmatprep.subr.mxu0 %v6162_v5 }
  0x90   : > { %5999 = vmatprep.mubr.msk.f32.mxu1 %vm6163_vm0, %v6162_v5  ;;  %5992 = vmatpush3.msra.mxu1 %v4575_v13 }
  0x91   : > { %5963 = vmatmul.mubr.f32.vlgmr.msra.gmra.mxu0 %v4075_v57  ;;  %5993 = vmatprep.subr.mxu1 %v6162_v5 }
  0x92   : > { %5971 = vmatpush3.msra.mxu0 %v4117_v54  ;;  %5972 = vmatprep.mubr.msk.f32.mxu0 %vm6163_vm0, %v6162_v5 }
  0x93   : > { %5980 = vmatprep.subr.mxu0 %v6162_v5  ;;  %5994 = vmatpush3.msra.mxu1 %v4582_v17 }
  0x94   : > { %5995 = vmatprep.subr.mxu1 %v6162_v5 }
  0x95   : > { %5973 = vmatmul.mubr.f32.vlgmr.msra.gmra.mxu0 %v4074_v55  ;;  %5996 = vmatpush3.msra.mxu1 %v4589_v20 }
  0x96   : > { %5988 = vmatprep.mubr.msk.f32.mxu0 %vm6163_vm0, %v6162_v5  ;;  %5981 = vmatpush3.msra.mxu0 %v6601_v63 }
  0x97   : > { %5982 = vmatprep.subr.mxu0 %v6162_v5  ;;  %5997 = vmatprep.subr.mxu1 %v6162_v5 }
  0x98   : > { %5983 = vmatpush3.msra.mxu0 %v6609_v2  ;;  %5998 = vmatpush3.msra.mxu1 %v4596_v22 }
  0x99   : > { %5984 = vmatprep.subr.mxu0 %v6162_v5  ;;  %6013 = vmatprep.subr.mxu1 %v6162_v5 }
  0x9a   : > { %5985 = vmatpush3.msra.mxu0 %v6620_v7 }
  0x9b   : > { %5986 = vmatprep.subr.mxu0 %v6162_v5 }
  0x9c   : > { %5987 = vmatpush3.msra.mxu0 %v6634_v12 }
  0x9d   : > { %6002 = vmatprep.subr.mxu0 %v6162_v5 }
  0xe7   : > { %v552_v23 = vpop.f32.mrf.mxu1 }
  0xe9   : > { %v5719_v24 = vpop.f32.mrf.mxu1 }
  0xeb   : > { %v700_v25 = vpop.f32.mrf.mxu1 }
  0xed   : > { %v5729_v26 = vpop.f32.mrf.mxu1  ;;  %v476_v27 = vpop.f32.mrf.mxu0 }
  0xee   : > { %v553_v29 = vadd.f32 %v552_v23, %v476_v27 }
  0xef   : > { %v846_v28 = vpop.f32.mrf.mxu1  ;;  %v5714_v30 = vpop.f32.mrf.mxu0 }
  0xf1   : > { %v5739_v31 = vpop.f32.mrf.mxu1  ;;  %v626_v32 = vpop.f32.mrf.mxu0 }
  0xf2   : > { %v627_v34 = vadd.f32 %v626_v32, %v553_v29 }
  0xf3   : > { %v998_v33 = vpop.f32.mrf.mxu1  ;;  %v5724_v35 = vpop.f32.mrf.mxu0 }
  0xf4   : > { %v701_v37 = vadd.f32 %v700_v25, %v627_v34 }
  0xf5   : > { %v5749_v36 = vpop.f32.mrf.mxu1  ;;  %v774_v38 = vpop.f32.mrf.mxu0 }
  0xf6   : > { %v775_v40 = vadd.f32 %v774_v38, %v701_v37 }
  0xf7   : > { %v1146_v39 = vpop.f32.mrf.mxu1  ;;  %v5734_v41 = vpop.f32.mrf.mxu0 }
  0xf8   : > { %v847_v43 = vadd.f32 %v846_v28, %v775_v40 }
  0xf9   : > { %v5759_v42 = vpop.f32.mrf.mxu1  ;;  %v922_v44 = vpop.f32.mrf.mxu0 }
  0xfa   : > { %v999_v46 = vadd.f32 %v998_v33, %v922_v44 }
  0xfb   : > { %v1292_v45 = vpop.f32.mrf.mxu1  ;;  %v5744_v47 = vpop.f32.mrf.mxu0 }
  0xfd   : > { %v5769_v48 = vpop.f32.mrf.mxu1  ;;  %v1072_v49 = vpop.f32.mrf.mxu0 }
  0xfe   : > { %v1073_v51 = vadd.f32 %v1072_v49, %v999_v46 }
  0xff   : > { %v1451_v50 = vpop.f32.mrf.mxu1  ;;  %v5754_v52 = vpop.f32.mrf.mxu0 }
 0x100   : > { %v1147_v54 = vadd.f32 %v1146_v39, %v1073_v51 }
 0x101   : > { %v5779_v53 = vpop.f32.mrf.mxu1  ;;  %v1220_v55 = vpop.f32.mrf.mxu0 }
 0x102   : > { %v1221_v57 = vadd.f32 %v1220_v55, %v1147_v54 }
 0x103   : > { %v1599_v56 = vpop.f32.mrf.mxu1  ;;  %v5764_v58 = vpop.f32.mrf.mxu0 }
 0x104   : > { %v1293_v60 = vadd.f32 %v1292_v45, %v1221_v57 }
 0x105   : > { %v5789_v59 = vpop.f32.mrf.mxu1  ;;  %v1375_v61 = vpop.f32.mrf.mxu0 }
 0x106   : > { %v1296_v0 = vmul.f32 %v1293_v60, %v847_v43  ;;  %v1452_v3 = vadd.f32 %v1451_v50, %v1375_v61 }
 0x107   : > { %v1745_v62 = vpop.f32.mrf.mxu1  ;;  %v5774_v8 = vpop.f32.mrf.mxu0 }
 0x109   : > { %v5799_v9 = vpop.f32.mrf.mxu1  ;;  %v1525_v13 = vpop.f32.mrf.mxu0 }
 0x10a   : > { %v1526_v17 = vadd.f32 %v1525_v13, %v1452_v3 }
 0x10b   : > { %v1897_v14 = vpop.f32.mrf.mxu1  ;;  %v5784_v18 = vpop.f32.mrf.mxu0 }
 0x10c   : > { %v1600_v21 = vadd.f32 %v1599_v56, %v1526_v17 }
 0x10d   : > { %v5809_v20 = vpop.f32.mrf.mxu1  ;;  %v1673_v22 = vpop.f32.mrf.mxu0 }
 0x10e   : > { %v1674_v24 = vadd.f32 %v1673_v22, %v1600_v21 }
 0x10f   : > { %v2045_v23 = vpop.f32.mrf.mxu1  ;;  %v5794_v25 = vpop.f32.mrf.mxu0 }
 0x110   : > { %v1746_v27 = vadd.f32 %v1745_v62, %v1674_v24 }
 0x111   : > { %v5819_v26 = vpop.f32.mrf.mxu1  ;;  %v1821_v28 = vpop.f32.mrf.mxu0 }
 0x112   : > { %v1898_v30 = vadd.f32 %v1897_v14, %v1821_v28 }
 0x113   : > { %v2191_v29 = vpop.f32.mrf.mxu1  ;;  %v5804_v31 = vpop.f32.mrf.mxu0 }
 0x115   : > { %v5829_v32 = vpop.f32.mrf.mxu1  ;;  %v1971_v33 = vpop.f32.mrf.mxu0 }
 0x116   : > { %v1972_v35 = vadd.f32 %v1971_v33, %v1898_v30 }
 0x117   : > { %v2351_v34 = vpop.f32.mrf.mxu1  ;;  %v5814_v36 = vpop.f32.mrf.mxu0 }
 0x118   : > { %v2046_v38 = vadd.f32 %v2045_v23, %v1972_v35 }
 0x119   : > { %v5839_v37 = vpop.f32.mrf.mxu1  ;;  %v2119_v39 = vpop.f32.mrf.mxu0 }
 0x11a   : > { %v2120_v41 = vadd.f32 %v2119_v39, %v2046_v38 }
 0x11b   : > { %v2499_v40 = vpop.f32.mrf.mxu1  ;;  %v5824_v42 = vpop.f32.mrf.mxu0 }
 0x11c   : > { %v2192_v44 = vadd.f32 %v2191_v29, %v2120_v41 }
 0x11d   : > { %v5849_v43 = vpop.f32.mrf.mxu1  ;;  %v2275_v45 = vpop.f32.mrf.mxu0 }
 0x11e   : > { %v2195_v47 = vmul.f32 %v2192_v44, %v1746_v27  ;;  %v2352_v48 = vadd.f32 %v2351_v34, %v2275_v45 }
 0x11f   : > { %v2645_v46 = vpop.f32.mrf.mxu1  ;;  %v5834_v49 = vpop.f32.mrf.mxu0 }
 0x120   : > { %v2196_v51 = vadd.f32 %v2195_v47, %v1296_v0 }
 0x121   : > { %v5859_v50 = vpop.f32.mrf.mxu1  ;;  %v2425_v52 = vpop.f32.mrf.mxu0 }
 0x122   : > { %v2426_v54 = vadd.f32 %v2425_v52, %v2352_v48 }
 0x123   : > { %v2797_v53 = vpop.f32.mrf.mxu1  ;;  %v5844_v55 = vpop.f32.mrf.mxu0 }
 0x124   : > { %v2500_v57 = vadd.f32 %v2499_v40, %v2426_v54  ;;  %v5538_v55 = vld [vmem:[%s6851_s3] ss:$0 sm:$0xff] }
 0x125   : > { %v5869_v56 = vpop.f32.mrf.mxu1  ;;  %v2573_v58 = vpop.f32.mrf.mxu0 }
 0x126   : > { %v2574_v60 = vadd.f32 %v2573_v58, %v2500_v57 }
 0x127   : > { %v2945_v59 = vpop.f32.mrf.mxu1  ;;  %v5854_v61 = vpop.f32.mrf.mxu0 }
 0x128   : > { %v2646_v3 = vadd.f32 %v2645_v46, %v2574_v60 }
 0x129   : > { %v5879_v62 = vpop.f32.mrf.mxu1  ;;  %v2721_v8 = vpop.f32.mrf.mxu0 }
 0x12a   : > { %v2798_v17 = vadd.f32 %v2797_v53, %v2721_v8 }
 0x12b   : > { %v3091_v9 = vpop.f32.mrf.mxu1  ;;  %v5864_v13 = vpop.f32.mrf.mxu0 }
 0x12d   : > { %v5889_v14 = vpop.f32.mrf.mxu1  ;;  %v2871_v18 = vpop.f32.mrf.mxu0 }
 0x12e   : > { %v2872_v0 = vadd.f32 %v2871_v18, %v2798_v17 }
 0x12f   : > { %v3251_v20 = vpop.f32.mrf.mxu1  ;;  %v5874_v21 = vpop.f32.mrf.mxu0 }
 0x130   : > { %v2946_v23 = vadd.f32 %v2945_v59, %v2872_v0 }
 0x131   : > { %v5899_v22 = vpop.f32.mrf.mxu1  ;;  %v3019_v24 = vpop.f32.mrf.mxu0 }
 0x132   : > { %v3020_v26 = vadd.f32 %v3019_v24, %v2946_v23 }
 0x133   : > { %v3399_v25 = vpop.f32.mrf.mxu1  ;;  %v5884_v27 = vpop.f32.mrf.mxu0 }
 0x134   : > { %v3092_v29 = vadd.f32 %v3091_v9, %v3020_v26  ;;  %v4458_v26 = vld [vmem:[%s6854_s6 + $0x18] sm:$0xf] }
 0x135   : > { %v5909_v28 = vpop.f32.mrf.mxu1  ;;  %v3175_v30 = vpop.f32.mrf.mxu0 }
 0x136   : > { %v3095_v32 = vmul.f32 %v3092_v29, %v2646_v3  ;;  %v3252_v0 = vadd.f32 %v3251_v20, %v3175_v30  ;;  %v4457_v20 = vld [vmem:[%s6854_s6 + $0x10] sm:$0xff] }
 0x137   : > { %v6658_v31 = vpop.f32.mrf.mxu1  ;;  %v5894_v33 = vpop.f32.mrf.mxu0 }
 0x138   : > { %v6660_v35 = vadd.f32 %v3095_v32, %v2196_v51  ;;  %v4958_v32 = vsel %vm4956_vm3, %v4458_v26, 0 }
 0x139   : > { %v5919_v34 = vpop.f32.mrf.mxu1  ;;  %v3325_v36 = vpop.f32.mrf.mxu0 }
 0x13a   : > { %v3326_v24 = vadd.f32 %v3325_v36, %v3252_v0 }
 0x13b   : > { %v3697_v37 = vpop.f32.mrf.mxu1  ;;  %v5904_v38 = vpop.f32.mrf.mxu0 }
 0x13c   : > { %v3400_v33 = vadd.f32 %v3399_v25, %v3326_v24  ;;  %v4456_v25 = vld [vmem:[%s6854_s6 + $0x8] sm:$0xff] }
 0x13d   : > { %v5929_v39 = vpop.f32.mrf.mxu1  ;;  %v3473_v40 = vpop.f32.mrf.mxu0 }
 0x13e   : > { %v3474_v38 = vadd.f32 %v3473_v40, %v3400_v33 }
 0x13f   : > { %v3845_v41 = vpop.f32.mrf.mxu1  ;;  %v5914_v42 = vpop.f32.mrf.mxu0 }
 0x140   : > { %v4455_v42 = vld [vmem:[%s6854_s6] sm:$0xff]  ;;  %v3546_v40 = vadd.f32 %v6658_v31, %v3474_v38 }
 0x141   : > { %v5939_v43 = vpop.f32.mrf.mxu1  ;;  %v3621_v44 = vpop.f32.mrf.mxu0 }
 0x142   : > { %v3698_v14 = vadd.f32 %v3697_v37, %v3621_v44  ;;  %v6675_v37 = vand.u32 4294901760, %v4958_v32 }
 0x143   : > { %v3991_v45 = vpop.f32.mrf.mxu1  ;;  %v5924_v46 = vpop.f32.mrf.mxu0 }
 0x144   : > { %v6692_v46 = vsub.f32 %v4958_v32, %v6675_v37 }
 0x145   : > { %v5949_v47 = vpop.f32.mrf.mxu1  ;;  %v3771_v48 = vpop.f32.mrf.mxu0 }
 0x146   : > { %v3772_v21 = vadd.f32 %v3771_v48, %v3698_v14  ;;  %v6694_v47 = vand.u32 4294901760, %v4456_v25 }
 0x147   : > { %v4156_v49 = vpop.f32.mrf.mxu1  ;;  %v5934_v50 = vpop.f32.mrf.mxu0 }
 0x148   : > { %v3846_v28 = vadd.f32 %v3845_v41, %v3772_v21  ;;  %v6684_v41 = vand.u32 4294901760, %v4457_v20  ;;  %v6702_v50 = vand.u32 4294901760, %v4455_v42 }
 0x149   : > { %v5959_v52 = vpop.f32.mrf.mxu1  ;;  %v3919_v53 = vpop.f32.mrf.mxu0 }
 0x14a   : > { %v3920_v30 = vadd.f32 %v3919_v53, %v3846_v28  ;;  %v5066_v52 = vand.u32 4294901760, %v6692_v46  ;;  %v6708_v53 = vsub.f32 %v4456_v25, %v6694_v47 }
 0x14b   : > { %v4304_v54 = vpop.f32.mrf.mxu1  ;;  %v5944_v51 = vpop.f32.mrf.mxu0 }
 0x14c   : > { %v3992_v43 = vadd.f32 %v3991_v45, %v3920_v30 }
 0x14d   : > { %v5969_v56 = vpop.f32.mrf.mxu1  ;;  %v4080_v57 = vpop.f32.mrf.mxu0 }
 0x14e   : > { %v4081_v59 = vadd.f32 %v5538_v55, %v4080_v57  ;;  %v3995_v45 = vmul.f32 %v3992_v43, %v3546_v40  ;;  %v5080_v55 = vand.u32 4294901760, %v6708_v53 }
 0x14f   : > { %v4450_v58 = vpop.f32.mrf.mxu1  ;;  %v5954_v60 = vpop.f32.mrf.mxu0 }
 0x150   : > { %v4157_v62 = vadd.f32 %v4156_v49, %v4081_v59  ;;  %v6700_v49 = vsub.f32 %v4457_v20, %v6684_v41  ;;  %v3996_v51 = vadd.f32 %v3995_v45, %v6660_v35  ;;  %v5081_v57 = vsub.f32 %v6708_v53, %v5080_v55 }
 0x151   : > { %v5979_v61 = vpop.f32.mrf.mxu1  ;;  %v4230_v3 = vpop.f32.mrf.mxu0 }
 0x152   : > { %v4231_v8 = vadd.f32 %v4230_v3, %v4157_v62  ;;  %v5073_v31 = vand.u32 4294901760, %v6700_v49  ;;  %v4954_v56 = vsel %vm4952_vm4, %v3996_v51, 0 }
 0x153   : > { %v5964_v9 = vpop.f32.mrf.mxu0  ;;  %v6749_v60 = vand.u32 4294901760, %v4954_v56 }
 0x154   : > { %v4305_v13 = vadd.f32 %v4304_v54, %v4231_v8  ;;  %v6715_v54 = vsub.f32 %v4455_v42, %v6702_v50  ;;  %v5539_v42 = vld [vmem:[%s6856_s8] ss:$0 sm:$0xff] }
 0x155   : > { %v4378_v17 = vpop.f32.mrf.mxu0  ;;  %v5030_v62 = vsub.f32 %v4954_v56, %v6749_v60 }
 0x156   : > { %v4379_v18 = vadd.f32 %v4378_v17, %v4305_v13  ;;  %v5087_v35 = vand.u32 4294901760, %v6715_v54 }
 0x157   : > { %v5974_v22 = vpop.f32.mrf.mxu0 }
 0x158   : > { %v4451_v23 = vadd.f32 %v4450_v58, %v4379_v18  ;;  %v5088_v59 = vsub.f32 %v6715_v54, %v5087_v35 }
 0x15a   : > { %v4454_v27 = vmax.f32 %v4451_v23, 0.0  ;;  %v5089_v61 = vand.u32 4294901760, %v5088_v59 }
 0x15c   : > { %v4465_v29 = vsel %vm4463_vm2, %v4454_v27, 0 }
 0x15d   : > { %v6668_v34 = vand.u32 4294901760, %v4465_v29 }
 0x15f   : > { %v4537_v36 = vsub.f32 %v4465_v29, %v6668_v34  ;;  %6000 = vmatmul.mubr.f32.vlgmr.msra.gmra.mxu1 %v6668_v34 }
 0x160   : > { %6014 = vmatpush3.msra.mxu1 %v6601_v63  ;;  %6021 = vmatprep.mubr.msk.f32.mxu1 %vm6163_vm0, %v6162_v5 }
 0x161   : > { %6015 = vmatprep.subr.mxu1 %v6162_v5  ;;  %v4538_v39 = vand.u32 4294901760, %v4537_v36 }
 0x162   : > { %6016 = vmatpush3.msra.mxu1 %v6609_v2 }
 0x163   : > { %6017 = vmatprep.subr.mxu1 %v6162_v5  ;;  %v4539_v44 = vsub.f32 %v4537_v36, %v4538_v39 }
 0x164   : > { %6018 = vmatpush3.msra.mxu1 %v6620_v7 }
 0x165   : > { %6019 = vmatprep.subr.mxu1 %v6162_v5  ;;  %v4540_v48 = vand.u32 4294901760, %v4539_v44 }
 0x166   : > { %6020 = vmatpush3.msra.mxu1 %v6634_v12 }
 0x167   : > { %6022 = vmatmul.mubr.f32.vlgmr.msra.gmra.mxu1 %v4538_v39  ;;  %6035 = vmatprep.subr.mxu1 %v6162_v5 }
 0x168   : > { %5989 = vmatmul.mubr.f32.vlgmr.msra.gmra.mxu0 %v4540_v48  ;;  %6036 = vmatpush3.msra.mxu1 %v6601_v63  ;;  %v5067_v63 = vsub.f32 %v6692_v46, %v5066_v52 }
 0x169   : > { %6003 = vmatpush3.msra.mxu0 %v6607_v1  ;;  %6037 = vmatprep.subr.mxu1 %v6162_v5  ;;  %v5031_v1 = vand.u32 4294901760, %v5030_v62 }
 0x16a   : > { %6004 = vmatprep.subr.mxu0 %v6162_v5  ;;  %6038 = vmatpush3.msra.mxu1 %v6609_v2  ;;  %v5074_v2 = vsub.f32 %v6700_v49, %v5073_v31 }
 0x16b   : > { %6005 = vmatpush3.msra.mxu0 %v6618_v6  ;;  %6039 = vmatprep.subr.mxu1 %v6162_v5 }
 0x16c   : > { %6006 = vmatprep.subr.mxu0 %v6162_v5  ;;  %6040 = vmatpush3.msra.mxu1 %v6620_v7  ;;  %v5068_v7 = vand.u32 4294901760, %v5067_v63  ;;  %v5075_v58 = vand.u32 4294901760, %v5074_v2 }
 0x16d   : > { %6007 = vmatpush3.msra.mxu0 %v6632_v11  ;;  %6041 = vmatprep.subr.mxu1 %v6162_v5 }
 0x16e   : > { %6008 = vmatprep.subr.mxu0 %v6162_v5  ;;  %6010 = vmatprep.mubr.msk.f32.mxu0 %vm6163_vm0, %v6162_v5 }
 0x16f   : > { %6009 = vmatpush3.msra.mxu0 %v6643_v16  ;;  %6042 = vmatpush3.msra.mxu1 %v6634_v12  ;;  %v5082_v12 = vand.u32 4294901760, %v5081_v57 }
 0x170   : > { %6043 = vmatprep.mubr.msk.f32.mxu1 %vm6163_vm0, %v6162_v5  ;;  %6011 = vmatmul.mubr.f32.vlgmr.msra.gmra.mxu0 %v4537_v36 }
 0x171   : > { %6024 = vmatprep.subr.mxu0 %v6162_v5  ;;  %6044 = vmatmul.mubr.f32.vlgmr.msra.gmra.mxu1 %v6668_v34 }
 0x172   : > { %6057 = vmatprep.subr.mxu1 %v6162_v5  ;;  %6025 = vmatpush3.msra.mxu0 %v4573_v4  ;;  %v5032_v4 = vsub.f32 %v5030_v62, %v5031_v1 }
 0x173   : > { %6058 = vmatpush3.msra.mxu1 %v5068_v7  ;;  %6026 = vmatprep.subr.mxu0 %v6162_v5 }
 0x174   : > { %6059 = vmatprep.subr.mxu1 %v6162_v5  ;;  %6027 = vmatpush3.msra.mxu0 %v4580_v10  ;;  %v5033_v6 = vand.u32 4294901760, %v5032_v4 }
 0x175   : > { %6060 = vmatpush3.msra.mxu1 %v5075_v58  ;;  %6028 = vmatprep.subr.mxu0 %v6162_v5 }
 0x176   : > { %6061 = vmatprep.subr.mxu1 %v6162_v5  ;;  %6029 = vmatpush3.msra.mxu0 %v4587_v15 }
 0x177   : > { %6062 = vmatpush3.msra.mxu1 %v5082_v12  ;;  %6030 = vmatprep.subr.mxu0 %v6162_v5 }
 0x178   : > { %6063 = vmatprep.subr.mxu1 %v6162_v5  ;;  %6031 = vmatpush3.msra.mxu0 %v4594_v19 }
 0x179   : > { %6032 = vmatprep.mubr.msk.f32.mxu0 %vm6163_vm0, %v6162_v5  ;;  %6064 = vmatpush3.msra.mxu1 %v5089_v61 }
 0x17a   : > { %6065 = vmatprep.mubr.msk.f32.mxu1 %vm6163_vm0, %v6162_v5  ;;  %6033 = vmatmul.mubr.f32.vlgmr.msra.gmra.mxu0 %v6668_v34 }
 0x17b   : > { %6046 = vmatprep.subr.mxu0 %v6162_v5  ;;  %6066 = vmatmul.mubr.f32.vlgmr.msra.gmra.mxu1 %v6749_v60 }
 0x17c   : > { %6079 = vmatprep.subr.mxu1 %v6162_v5  ;;  %6047 = vmatpush3.msra.mxu0 %v6675_v37 }
 0x17d   : > { %6080 = vmatpush3.msra.mxu1 %v6675_v37  ;;  %6048 = vmatprep.subr.mxu0 %v6162_v5 }
 0x17e   : > { %6081 = vmatprep.subr.mxu1 %v6162_v5  ;;  %6049 = vmatpush3.msra.mxu0 %v6684_v41 }
 0x17f   : > { %6082 = vmatpush3.msra.mxu1 %v6684_v41  ;;  %6050 = vmatprep.subr.mxu0 %v6162_v5 }
 0x180   : > { %6083 = vmatprep.subr.mxu1 %v6162_v5  ;;  %6051 = vmatpush3.msra.mxu0 %v6694_v47 }
 0x181   : > { %6084 = vmatpush3.msra.mxu1 %v6694_v47  ;;  %6052 = vmatprep.subr.mxu0 %v6162_v5 }
 0x182   : > { %6085 = vmatprep.subr.mxu1 %v6162_v5  ;;  %6053 = vmatpush3.msra.mxu0 %v6702_v50 }
 0x183   : > { %6054 = vmatprep.mubr.msk.f32.mxu0 %vm6163_vm0, %v6162_v5  ;;  %6086 = vmatpush3.msra.mxu1 %v6702_v50 }
 0x184   : > { %6087 = vmatprep.mubr.msk.f32.mxu1 %vm6163_vm0, %v6162_v5  ;;  %6055 = vmatmul.mubr.f32.vlgmr.msra.gmra.mxu0 %v5033_v6 }
 0x185   : > { %6068 = vmatprep.subr.mxu0 %v6162_v5  ;;  %6088 = vmatmul.mubr.f32.vlgmr.msra.gmra.mxu1 %v5031_v1 }
 0x186   : > { %6101 = vmatprep.subr.mxu1 %v6162_v5  ;;  %6069 = vmatpush3.msra.mxu0 %v6692_v46 }
 0x187   : > { %6102 = vmatpush3.msra.mxu1 %v6675_v37  ;;  %6070 = vmatprep.subr.mxu0 %v6162_v5 }
 0x188   : > { %6103 = vmatprep.subr.mxu1 %v6162_v5  ;;  %6071 = vmatpush3.msra.mxu0 %v6700_v49 }
 0x189   : > { %6104 = vmatpush3.msra.mxu1 %v6684_v41  ;;  %6072 = vmatprep.subr.mxu0 %v6162_v5 }
 0x18a   : > { %6105 = vmatprep.subr.mxu1 %v6162_v5  ;;  %6073 = vmatpush3.msra.mxu0 %v6708_v53 }
 0x18b   : > { %6106 = vmatpush3.msra.mxu1 %v6694_v47  ;;  %6074 = vmatprep.subr.mxu0 %v6162_v5 }
 0x18c   : > { %6107 = vmatprep.subr.mxu1 %v6162_v5  ;;  %6075 = vmatpush3.msra.mxu0 %v6715_v54 }
 0x18d   : > { %6076 = vmatprep.mubr.msk.f32.mxu0 %vm6163_vm0, %v6162_v5  ;;  %6108 = vmatpush3.msra.mxu1 %v6702_v50 }
 0x18e   : > { %6109 = vmatprep.mubr.msk.f32.mxu1 %vm6163_vm0, %v6162_v5  ;;  %6077 = vmatmul.mubr.f32.vlgmr.msra.gmra.mxu0 %v5030_v62 }
 0x18f   : > { %6090 = vmatprep.subr.mxu0 %v6162_v5  ;;  %6110 = vmatmul.mubr.f32.vlgmr.msra.gmra.mxu1 %v6749_v60 }
 0x190   : > { %6091 = vmatpush3.msra.mxu0 %v5066_v52  ;;  %6098 = vmatprep.mubr.msk.f32.mxu0 %vm6163_vm0, %v6162_v5 }
 0x191   : > { %6092 = vmatprep.subr.mxu0 %v6162_v5 }
 0x192   : > { %6093 = vmatpush3.msra.mxu0 %v5073_v31 }
 0x193   : > { %6094 = vmatprep.subr.mxu0 %v6162_v5 }
 0x194   : > { %6095 = vmatpush3.msra.mxu0 %v5080_v55 }
 0x195   : > { %6096 = vmatprep.subr.mxu0 %v6162_v5 }
 0x196   : > { %6097 = vmatpush3.msra.mxu0 %v5087_v35 }
 0x197   : > { %6099 = vmatmul.mubr.f32.vlgmr.msra.gmra.mxu0 %v6749_v60 }
 0x21f   : > { %v4633_v10 = vpop.f32.mrf.mxu1 }
 0x221   : > { %v6001_v11 = vpop.f32.mrf.mxu1 }
 0x227   : > { %v4790_v15 = vpop.f32.mrf.mxu1 }
 0x228   : > { %v4542_v16 = vpop.f32.mrf.mxu0 }
 0x229   : > { %v6023_v19 = vpop.f32.mrf.mxu1  ;;  %v4634_v5 = vadd.f32 %v4633_v10, %v4542_v16 }
 0x22a   : > { %v5990_v3 = vpop.f32.mrf.mxu0 }
 0x230   : > { %v4713_v8 = vpop.f32.mrf.mxu0 }
 0x231   : > { %v4948_v9 = vpop.f32.mrf.mxu1  ;;  %v4714_v22 = vadd.f32 %v4713_v8, %v4634_v5 }
 0x232   : > { %v6012_v13 = vpop.f32.mrf.mxu0 }
 0x233   : > { %v6045_v14 = vpop.f32.mrf.mxu1  ;;  %v4791_v23 = vadd.f32 %v4790_v15, %v4714_v22 }
 0x23a   : > { %v4873_v17 = vpop.f32.mrf.mxu0 }
 0x23b   : > { %v5126_v18 = vpop.f32.mrf.mxu1  ;;  %v4874_v27 = vadd.f32 %v4873_v17, %v4791_v23 }
 0x23c   : > { %v6034_v0 = vpop.f32.mrf.mxu0 }
 0x23d   : > { %v6067_v21 = vpop.f32.mrf.mxu1  ;;  %v4949_v32 = vadd.f32 %v4948_v9, %v4874_v27 }
 0x244   : > { %v5035_v24 = vpop.f32.mrf.mxu0 }
 0x245   : > { %v5283_v26 = vpop.f32.mrf.mxu1  ;;  %v5036_v33 = vadd.f32 %v5035_v24, %v4949_v32 }
 0x246   : > { %v6056_v28 = vpop.f32.mrf.mxu0 }
 0x247   : > { %v6089_v29 = vpop.f32.mrf.mxu1  ;;  %v5127_v30 = vadd.f32 %v5126_v18, %v5036_v33 }
 0x24e   : > { %v5206_v34 = vpop.f32.mrf.mxu0 }
 0x24f   : > { %v5441_v20 = vpop.f32.mrf.mxu1  ;;  %v5207_v25 = vadd.f32 %v5206_v34, %v5127_v30 }
 0x250   : > { %v6078_v36 = vpop.f32.mrf.mxu0 }
 0x251   : > { %v6111_v37 = vpop.f32.mrf.mxu1  ;;  %v5284_v38 = vadd.f32 %v5283_v26, %v5207_v25 }
 0x257   : > { %v5366_v39 = vpop.f32.mrf.mxu0 }
 0x258   : > { %v5367_v41 = vadd.f32 %v5366_v39, %v5284_v38 }
 0x259   : > { %v6100_v43 = vpop.f32.mrf.mxu0 }
 0x25a   : > { %v5442_v44 = vadd.f32 %v5441_v20, %v5367_v41 }
 0x25c   : > { %v5452_v46 = vadd.f32 %v5539_v42, %v5442_v44 }
 0x25e   : > { %5453 = vst.msk [vmem:[%s394_s26] sm:$0xff] %vm400_vm1, %v5452_v46 }
 0x25f PF: > { %p16_p9 = scmp.ge.s32.totalorder %s6231_s13, 4   ;;  %s6858_s30 = smov %s6156_s10 }
 0x260   : > { %s6859_s10 = smov %s6240_s16  ;;  %s6860_s11 = smov %s6231_s13 }
 0x261   :  { %18 = sbr.rel (!%p16_p9) target bundleno = 2 (0x2), region = 135 }

</bundles_post_ra>
